<compile_context>
chip_gen: v7x
topology: tpu7x:2x2x1
jax: 0.10.0
libtpu: 0.0.40
codegen_flags: <defaults>
</compile_context>

<pallas_src>
import functools

import jax
import jax.numpy as jnp
from jax.experimental import pallas as pl
from jax.experimental.pallas import tpu as pltpu

_LANES = 512          # lane-dense last dim (multiple of 128)
_MAX_TILE_ROWS = 1024 # <=1024 rows * 512 lanes * 4 B = 2 MiB per f32 block


def _dropout_kernel(seed_ref, x_ref, o_ref, *, threshold, scale, lanes, tile_rows):
    # Global element index of every lane in this tile (int32 wraparound is fine
    # for hashing purposes).
    rows_i = jax.lax.broadcasted_iota(jnp.int32, x_ref.shape, 0)
    cols_i = jax.lax.broadcasted_iota(jnp.int32, x_ref.shape, 1)
    row0 = pl.program_id(0) * tile_rows
    idx = (row0 + rows_i) * lanes + cols_i

    # Counter-based PRNG: lowbias32 finalizer of (index * golden_ratio + seed).
    # Per-tile masks differ automatically because the global index differs.
    h = idx.astype(jnp.uint32) * jnp.uint32(0x9E3779B9) + seed_ref[0].astype(jnp.uint32)
    h = h ^ (h >> 16)
    h = h * jnp.uint32(0x7FEB352D)
    h = h ^ (h >> 15)
    h = h * jnp.uint32(0x846CA68B)
    h = h ^ (h >> 16)

    # drop iff uniform32 < floor(p * 2^32)  (full 32-bit threshold resolution)
    keep = h >= jnp.uint32(threshold)

    xv = x_ref[...]
    scale_c = jnp.asarray(scale, dtype=xv.dtype)   # mask/scale in native dtype
    o_ref[...] = jnp.where(keep, xv * scale_c, jnp.zeros_like(xv))


def dropout(x, p=0.5, seed=0, training=True):
    """Pallas TPU dropout matching the reference PyTorch forward()."""
    assert 0 <= p < 1, f"Dropout probability must be in [0, 1), got {p}"
    # Reference module is a no-op when p == 0 or grad is disabled (eval mode).
    if p == 0.0 or not training:
        return x

    orig_shape = x.shape
    total = int(x.size)

    # Flatten to a lane-dense 2-D slab, padding the tail so the reshape works.
    padded = pl.cdiv(total, _LANES) * _LANES
    flat = x.reshape(-1)
    if padded != total:
        flat = jnp.pad(flat, (0, padded - total))
    rows = padded // _LANES
    x2d = flat.reshape(rows, _LANES)

    # Row tiling: big streaming blocks, second-to-last dim either a multiple of
    # 8 (1024) or the full row extent (small inputs), per the (8,128) rule.
    tile_rows = rows if rows <= _MAX_TILE_ROWS else _MAX_TILE_ROWS
    grid = (pl.cdiv(rows, tile_rows),)

    threshold = min(max(int(round(p * (1 << 32))), 0), (1 << 32) - 1)
    scale = 1.0 / (1.0 - p)
    seed_arr = jnp.asarray([seed], dtype=jnp.int32)

    kernel = functools.partial(
        _dropout_kernel,
        threshold=threshold,
        scale=scale,
        lanes=_LANES,
        tile_rows=tile_rows,
    )

    out2d = pl.pallas_call(
        kernel,
        out_shape=jax.ShapeDtypeStruct((rows, _LANES), x.dtype),
        grid=grid,
        in_specs=[
            pl.BlockSpec(memory_space=pltpu.MemorySpace.SMEM),     # seed scalar
            pl.BlockSpec((tile_rows, _LANES), lambda i: (i, 0)),   # streamed rows
        ],
        out_specs=pl.BlockSpec((tile_rows, _LANES), lambda i: (i, 0)),
        compiler_params=pltpu.CompilerParams(
            dimension_semantics=("parallel",),   # independent tiles -> both TCs
        ),
    )(seed_arr, x2d)

    out_flat = out2d.reshape(-1)
    if padded != total:
        out_flat = out_flat[:total]
    return out_flat.reshape(orig_shape)


if __name__ == "__main__":
    key = jax.random.PRNGKey(0)
    # NCHW input, small shape consistent with a conv-net feature map.
    x = jax.random.normal(key, (2, 4, 16, 16), dtype=jnp.float32)

    p = 0.5
    y = jax.block_until_ready(dropout(x, p=p, seed=1234, training=True))

    # Sanity checks: shape/dtype preserved; surviving elements are x / (1 - p),
    # dropped elements are exactly 0; drop fraction is roughly p.
    assert y.shape == x.shape and y.dtype == x.dtype
    dropped_mask = (y == 0.0)
    kept_mask = ~dropped_mask
    scale = 1.0 / (1.0 - p)
    assert jnp.allclose(y[kept_mask], x[kept_mask] * scale, rtol=1e-6, atol=1e-6)
    frac_dropped = float(jnp.mean(dropped_mask.astype(jnp.float32)))
    assert 0.3 < frac_dropped < 0.7, f"unexpected drop fraction {frac_dropped}"

    # Ragged size (not a multiple of the lane width) exercises the pad/slice path.
    x2 = jax.random.normal(jax.random.PRNGKey(1), (2, 3, 5, 7), dtype=jnp.float32)
    p2 = 0.3
    y2 = jax.block_until_ready(dropout(x2, p=p2, seed=7, training=True))
    k2 = y2 != 0.0
    assert jnp.allclose(y2[k2], x2[k2] / (1.0 - p2), rtol=1e-6, atol=1e-6)

    # Eval path (grad disabled) must be identity.
    y_eval = jax.block_until_ready(dropout(x, p=p, seed=1234, training=False))
    assert jnp.array_equal(y_eval, x)

    print("KERNEL_OK")
</pallas_src>

<mosaic_0001>
module attributes {stable_mosaic.version = 11 : i64} {
  func.func @_dropout_kernel(%arg0: i32, %arg1: memref<1xi32, #tpu.memory_space<smem>>, %arg2: memref<4x512xf32, #tpu.memory_space<vmem>>, %arg3: memref<4x512xf32, #tpu.memory_space<vmem>>) attributes {dimension_semantics = [#tpu.dimension_semantics<parallel>], iteration_bounds = array<i64: 1>, scalar_prefetch = 0 : i64, scratch_operands = 0 : i64, tpu.core_type = #tpu.core_type<tc>, window_params = [{transform_indices = @transform_0, window_bounds = array<i64: 1>}, {transform_indices = @transform_1, window_bounds = array<i64: 4, 512>}, {transform_indices = @transform_2, window_bounds = array<i64: 4, 512>}]} {
    %0 = tpu.iota {dimensions = array<i32: 0>} : vector<4x512xi32>
    %1 = tpu.iota {dimensions = array<i32: 1>} : vector<4x512xi32>
    %c4_i32 = arith.constant 4 : i32
    %2 = arith.muli %arg0, %c4_i32 : i32
    %3 = vector.broadcast %2 : i32 to vector<4x512xi32>
    %4 = arith.addi %3, %0 : vector<4x512xi32>
    %c512_i32 = arith.constant 512 : i32
    %5 = vector.broadcast %c512_i32 : i32 to vector<4x512xi32>
    %6 = arith.muli %4, %5 : vector<4x512xi32>
    %7 = arith.addi %6, %1 : vector<4x512xi32>
    %c-1640531527_i32 = arith.constant -1640531527 : i32
    %8 = vector.broadcast %c-1640531527_i32 : i32 to vector<4x512xi32>
    %9 = arith.muli %7, %8 : vector<4x512xi32>
    %c0 = arith.constant 0 : index
    %10 = memref.load %arg1[%c0] : memref<1xi32, #tpu.memory_space<smem>>
    %11 = vector.broadcast %10 : i32 to vector<4x512xi32>
    %12 = arith.addi %9, %11 : vector<4x512xi32>
    %c16_i32 = arith.constant 16 : i32
    %13 = vector.broadcast %c16_i32 : i32 to vector<4x512xi32>
    %14 = arith.shrui %12, %13 : vector<4x512xi32>
    %15 = arith.xori %12, %14 : vector<4x512xi32>
    %c2146121005_i32 = arith.constant 2146121005 : i32
    %16 = vector.broadcast %c2146121005_i32 : i32 to vector<4x512xi32>
    %17 = arith.muli %15, %16 : vector<4x512xi32>
    %c15_i32 = arith.constant 15 : i32
    %18 = vector.broadcast %c15_i32 : i32 to vector<4x512xi32>
    %19 = arith.shrui %17, %18 : vector<4x512xi32>
    %20 = arith.xori %17, %19 : vector<4x512xi32>
    %c-2073254261_i32 = arith.constant -2073254261 : i32
    %21 = vector.broadcast %c-2073254261_i32 : i32 to vector<4x512xi32>
    %22 = arith.muli %20, %21 : vector<4x512xi32>
    %c16_i32_0 = arith.constant 16 : i32
    %23 = vector.broadcast %c16_i32_0 : i32 to vector<4x512xi32>
    %24 = arith.shrui %22, %23 : vector<4x512xi32>
    %25 = arith.xori %22, %24 : vector<4x512xi32>
    %c-2147483648_i32 = arith.constant -2147483648 : i32
    %26 = vector.broadcast %c-2147483648_i32 : i32 to vector<4x512xi32>
    %27 = arith.cmpi uge, %25, %26 : vector<4x512xi32>
    %c0_1 = arith.constant 0 : index
    %c0_2 = arith.constant 0 : index
    %28 = vector.load %arg2[%c0_1, %c0_2] : memref<4x512xf32, #tpu.memory_space<vmem>>, vector<4x512xf32>
    %cst = arith.constant 2.000000e+00 : f32
    %29 = vector.broadcast %cst : f32 to vector<4x512xf32>
    %30 = arith.mulf %28, %29 : vector<4x512xf32>
    %cst_3 = arith.constant 0.000000e+00 : f32
    %31 = vector.broadcast %cst_3 : f32 to vector<4x512xf32>
    %32 = arith.select %27, %30, %31 : vector<4x512xi1>, vector<4x512xf32>
    %c0_4 = arith.constant 0 : index
    %c0_5 = arith.constant 0 : index
    %33 = vector.load %arg3[%c0_4, %c0_5] : memref<4x512xf32, #tpu.memory_space<vmem>>, vector<4x512xf32>
    tpu.vector_store %arg3[%c0_4, %c0_5], %32 {strides = array<i32>} : memref<4x512xf32, #tpu.memory_space<vmem>>, vector<4x512xf32>,
    return
  }
  func.func @transform_0(%arg0: i32) -> i32 {
    %c0_i32 = arith.constant 0 : i32
    %c0_i32_0 = arith.constant 0 : i32
    return %c0_i32 : i32
  }
  func.func @transform_1(%arg0: i32) -> (i32, i32) {
    %c0_i32 = arith.constant 0 : i32
    %c0_i32_0 = arith.constant 0 : i32
    return %arg0, %c0_i32 : i32, i32
  }
  func.func @transform_2(%arg0: i32) -> (i32, i32) {
    %c0_i32 = arith.constant 0 : i32
    %c0_i32_0 = arith.constant 0 : i32
    return %arg0, %c0_i32 : i32, i32
  }
}

</mosaic_0001>

<bundles_post_ra>
// kernel: tpu_custom_call.1
= control target key start
LH: loop header
LB: loop body
LE: loop exit
PB: predicated region body
PF: predicated region fallthrough
CT: control target
= control target key end

     0   :  { %8 = vsyncpa [#allocation4], 0  ;;  %s219_s0 = inlined_call_operand.<no memory space> [shape: s32[1], index: 0, kind: input, shape index: {}]   ;;  %s220_s1 = inlined_call_operand.hbm [shape: f32[4,512], index: 1, kind: input, shape index: {}]   ;;  %s221_s2 = inlined_call_operand.hbm [shape: f32[4,512], index: 2, kind: output, shape index: {}]  }
   0x1   :  { %9 = vsyncpa [#allocation5], 0  ;;  %s175_s9 = smov [#allocation3]   ;;  %s127_s13 = scalar_lea.hbm %s220_s1, 256 }
   0x2   :  { %s18_s10 = sshll.u32 %s175_s9, 4  ;;  %p128_p0 = scmp.ne.s32.totalorder %s220_s1, %s127_s13  ;;  %s19_s10 = int_to_ptr.vmem [resolvable:$true] %s18_s10 }
   0x3   :  { %p131_p1 = scmp.lt.u32.totalorder %s127_s13, %s220_s1 }
   0x5   :  { %p133_p2 = pnand %p131_p1, %p128_p0 }
   0x7   :  { %136 = shalt.err (!%p133_p2)
}
   0x8   :  { %s137_s18 = scalar_lea.vmem %s19_s10, 256  ;;  %p142_p4 = scmp.lt.s32.totalorder %s19_s10, %s19_s10 }
   0x9   :  { %p138_p3 = scmp.ne.s32.totalorder %s19_s10, %s137_s18  ;;  %p143_p5 = scmp.lt.s32.totalorder %s137_s18, %s137_s18 }
   0xb   :  { %p144_p6 = por %p143_p5, %p142_p4 }
   0xd   :  { %p145_p7 = pnand %p144_p6, %p138_p3 }
   0xf   :  { %148 = shalt.err (!%p145_p7)
}
  0x10   :  { %21 = dma.hbm_to_vmem [thread:$0]  %s220_s1, 256, %s19_s10, [#allocation4]  }
  0x11   :  { %171 = dma.done.wait [#allocation4], 256  }
  0x12   :  { %172 = vsyncadd [#allocation4], 4294967040  ;;  %v25_v0 = vlaneseq  ;;  %v45_v11 = vstv %s219_s0  ;;  %v86_v34 = vld [vmem:[#allocation3] sm:$0xff]  ;;  %v87_v37 = vld [vmem:[#allocation3 + $0x8] sm:$0xff]  ;;  %s176_s0 = smov [#allocation6]  }
  0x13   :  { %v88_v40 = vmul.f32 2.0, %v86_v34  ;;  %v89_v45 = vmul.f32 2.0, %v87_v37  ;;  %s116_s1 = sshll.u32 %s176_s0, 4  ;;  %s117_s1 = int_to_ptr.vmem [resolvable:$true] %s116_s1 }
  0x14   :  { %v26_v1 = vshrl.u32 %v25_v0, 7  ;;  %v28_v2 = vand.u32 127, %v25_v0  ;;  %s149_s23 = scalar_lea.vmem %s117_s1, 256  ;;  %p154_p9 = scmp.lt.s32.totalorder %s117_s1, %s117_s1 }
  0x15   :  { %v92_v50 = vcombine.high %v88_v40, %v88_v40  ;;  %v93_v55 = vcombine.high %v89_v45, %v89_v45  ;;  %p150_p8 = scmp.ne.s32.totalorder %s117_s1, %s149_s23  ;;  %p155_p10 = scmp.lt.s32.totalorder %s149_s23, %s149_s23 }
  0x16   :  { %v29_v3 = vadd.s32 128, %v28_v2  ;;  %v35_v4 = vmul.u32 512, %v26_v1  ;;  %v30_v5 = vadd.s32 256, %v28_v2  ;;  %v31_v6 = vadd.s32 384, %v28_v2 }
  0x17   :  { %p156_p11 = por %p155_p10, %p154_p9 }
  0x18   :  { %v36_v7 = vadd.s32 %v35_v4, %v28_v2  ;;  %v37_v8 = vadd.s32 %v35_v4, %v29_v3  ;;  %v38_v9 = vadd.s32 %v35_v4, %v30_v5  ;;  %v39_v10 = vadd.s32 %v35_v4, %v31_v6 }
  0x19   :  { %p157_p12 = pnand %p156_p11, %p150_p8 }
  0x1a   :  { %v40_v12 = vmul.u32 2654435769, %v36_v7  ;;  %v41_v13 = vmul.u32 2654435769, %v37_v8 }
  0x1b   :  { %v42_v14 = vmul.u32 2654435769, %v38_v9  ;;  %v43_v15 = vmul.u32 2654435769, %v39_v10 }
  0x1c   :  { %v46_v16 = vadd.s32 %v45_v11, %v40_v12  ;;  %v47_v17 = vadd.s32 %v45_v11, %v41_v13 }
  0x1d   :  { %v48_v18 = vadd.s32 %v45_v11, %v42_v14  ;;  %v49_v19 = vadd.s32 %v45_v11, %v43_v15 }
  0x1e   :  { %v50_v20 = vshrl.u32 %v46_v16, 16  ;;  %v51_v21 = vshrl.u32 %v47_v17, 16 }
  0x1f   :  { %v52_v22 = vshrl.u32 %v48_v18, 16  ;;  %v53_v23 = vshrl.u32 %v49_v19, 16 }
  0x20   :  { %v54_v24 = vxor.u32 %v50_v20, %v46_v16  ;;  %v55_v25 = vxor.u32 %v51_v21, %v47_v17 }
  0x21   :  { %v56_v26 = vxor.u32 %v52_v22, %v48_v18  ;;  %v57_v27 = vxor.u32 %v53_v23, %v49_v19 }
  0x22   :  { %v58_v28 = vmul.u32 2146121005, %v54_v24  ;;  %v59_v29 = vmul.u32 2146121005, %v55_v25 }
  0x23   :  { %v60_v30 = vmul.u32 2146121005, %v56_v26  ;;  %v61_v31 = vmul.u32 2146121005, %v57_v27 }
  0x24   :  { %v62_v32 = vshrl.u32 %v58_v28, 15  ;;  %v63_v33 = vshrl.u32 %v59_v29, 15 }
  0x25   :  { %v64_v35 = vshrl.u32 %v60_v30, 15  ;;  %v65_v36 = vshrl.u32 %v61_v31, 15 }
  0x26   :  { %v66_v38 = vxor.u32 %v62_v32, %v58_v28  ;;  %v67_v39 = vxor.u32 %v63_v33, %v59_v29 }
  0x27   :  { %v68_v41 = vxor.u32 %v64_v35, %v60_v30  ;;  %v69_v42 = vxor.u32 %v65_v36, %v61_v31 }
  0x28   :  { %v70_v43 = vmul.u32 2221713035, %v66_v38  ;;  %v71_v44 = vmul.u32 2221713035, %v67_v39 }
  0x29   :  { %v72_v46 = vmul.u32 2221713035, %v68_v41  ;;  %v73_v47 = vmul.u32 2221713035, %v69_v42 }
  0x2a   :  { %v74_v48 = vshrl.u32 %v70_v43, 16  ;;  %v75_v49 = vshrl.u32 %v71_v44, 16 }
  0x2b   :  { %v76_v51 = vshrl.u32 %v72_v46, 16  ;;  %v77_v52 = vshrl.u32 %v73_v47, 16 }
  0x2c   :  { %v78_v53 = vxor.u32 %v74_v48, %v70_v43  ;;  %v79_v54 = vxor.u32 %v75_v49, %v71_v44 }
  0x2d   :  { %v80_v56 = vxor.u32 %v76_v51, %v72_v46  ;;  %v81_v57 = vxor.u32 %v77_v52, %v73_v47 }
  0x2e   :  { %vm82_vm0 = vcmp.ge.u32.totalorder %v78_v53, 2147483648  ;;  %vm83_vm1 = vcmp.ge.u32.totalorder %v79_v54, 2147483648 }
  0x2f   :  { %v96_v58 = vsel %vm82_vm0, %v88_v40, 0.0  ;;  %v97_v59 = vsel %vm83_vm1, %v92_v50, 0.0  ;;  %vm84_vm2 = vcmp.ge.u32.totalorder %v80_v56, 2147483648  ;;  %vm85_vm3 = vcmp.ge.u32.totalorder %v81_v57, 2147483648 }
  0x30   :  { %v104_v60 = vcombine.low %v96_v58, %v97_v59  ;;  %v98_v61 = vsel %vm84_vm2, %v89_v45, 0.0  ;;  %v99_v62 = vsel %vm85_vm3, %v93_v55, 0.0 }
  0x31   :  { %v105_v63 = vcombine.low %v98_v61, %v99_v62 }
  0x32   :  { %108 = vst [vmem:[#allocation6] sm:$0xff] %v104_v60 }
  0x33   :  { %109 = vst [vmem:[#allocation6 + $0x8] sm:$0xff] %v105_v63 }
  0x34   :  { %160 = shalt.err (!%p157_p12)
}
  0x35   :  { %s161_s26 = scalar_lea.hbm %s221_s2, 256 }
  0x36   :  { %p162_p13 = scmp.ne.s32.totalorder %s221_s2, %s161_s26  ;;  %p165_p0 = scmp.lt.u32.totalorder %s161_s26, %s221_s2 }
  0x38   :  { %p167_p1 = pnand %p165_p0, %p162_p13 }
  0x3a   :  { %170 = shalt.err (!%p167_p1)
}
  0x3b   :  { %119 = dma.vmem_to_hbm [thread:$0]  %s117_s1, 256, %s221_s2, [#allocation5]  }
  0x3c   :  { %173 = dma.done.wait [#allocation5], 256  }
  0x3d   :  { %174 = vsyncadd [#allocation5], 4294967040 }
  0x3e   :  { %123 = vsyncpa [#allocation4], 1 }
  0x3f   :  { %124 = vsyncpa [#allocation5], 1 }

</bundles_post_ra>
